<compile_context>
chip_gen: v6e
topology: v6e:2x2x1
jax: 0.10.0
libtpu: 0.0.40
codegen_flags: <defaults>
</compile_context>

<pallas_src>
import functools

import jax
import jax.numpy as jnp
import numpy as np
from jax.experimental import pallas as pl
from jax.experimental.pallas import tpu as pltpu


# ----------------------------------------------------------------------------
# In-kernel helpers
# ----------------------------------------------------------------------------
def _decompose(idx, reso):
    """Split flat voxel index (z-major, x fastest) into per-axis coords."""
    if reso & (reso - 1) == 0:                      # power of two: shifts/masks
        lg = reso.bit_length() - 1
        xi = idx & (reso - 1)
        yi = (idx >> lg) & (reso - 1)
        zi = idx >> (2 * lg)
    else:
        xi = idx % reso
        yi = (idx // reso) % reso
        zi = idx // (reso * reso)
    return xi, yi, zi


def _gather(idx, wx, wy, wz, reso):
    """Gather the per-voxel channels for every point of the tile.

    idx        : (1, T) int32 flat voxel indices.
    wx, wy, wz : (8, reso) bf16 per-axis tables.
    Returns (8, T) f32; rows 0..5 are channels g0..g5, channel g6 is split
    across rows 6 (hi) and 7 (lo): g6 = g[6] + g[7].
    """
    T = idx.shape[1]
    xi, yi, zi = _decompose(idx, reso)
    sub = jax.lax.broadcasted_iota(jnp.int32, (reso, T), 0)
    # Block-wise one-hots (exact 0/1 in bf16); one iota, three compares.
    ohx = (sub == xi).astype(jnp.bfloat16)
    ohy = (sub == yi).astype(jnp.bfloat16)
    ohz = (sub == zi).astype(jnp.bfloat16)
    # Three accumulated K=reso MXU dots (f32 accumulation).
    g = jnp.dot(wx, ohx, preferred_element_type=jnp.float32)
    g = g + jnp.dot(wy, ohy, preferred_element_type=jnp.float32)
    g = g + jnp.dot(wz, ohz, preferred_element_type=jnp.float32)
    return g                                         # (8, T) f32


# ----------------------------------------------------------------------------
# Pallas kernels
# ----------------------------------------------------------------------------
def _sdf_kernel(idx_ref, pts_ref, wx_ref, wy_ref, wz_ref, out_ref, *, reso):
    g = _gather(idx_ref[...], wx_ref[...], wy_ref[...], wz_ref[...], reso)
    p = pts_ref[...]                                 # (3, T)
    gp = g[0:3, :] * p                               # [a0, a1, a2]
    t = gp + g[3:6, :]                               # [a0+a3, a1+a4, a2+a5]
    g6 = g[6:7, :] + g[7:8, :]                       # hi + lo of a6
    num = jnp.sum(t * p, axis=0, keepdims=True) + g6
    d = gp + t                                       # [2a0+a3, 2a1+a4, 2a2+a5]
    den_sq = jnp.sum(d * d, axis=0, keepdims=True)
    # num / sqrt(den_sq) / reso  ==  num * rsqrt(den_sq * reso^2)
    out_ref[...] = num * jax.lax.rsqrt(den_sq * float(reso * reso))


def _normal_kernel(idx_ref, pts_ref, wx_ref, wy_ref, wz_ref, out_ref, *, reso):
    g = _gather(idx_ref[...], wx_ref[...], wy_ref[...], wz_ref[...], reso)
    p = pts_ref[...]                                 # (3, T)
    n = 2.0 * g[0:3, :] * p + g[3:6, :]              # (3, T)
    nsq = jnp.sum(n * n, axis=0, keepdims=True)      # (1, T)
    # torch.nn.functional.normalize(eps=1e-12): n / max(||n||, eps)
    inv = jax.lax.rsqrt(jnp.maximum(nsq, 1e-24))
    out_ref[...] = n * inv                           # single (3, T) store


# ----------------------------------------------------------------------------
# Launch wrapper
# ----------------------------------------------------------------------------
def _choose_tile(n, tile):
    """Point-tile selection: multiple of 256, capped for v7x VMEM, and clamped
    down for small point lists so >= 2 grid steps feed both v7x TensorCores."""
    tile = max(256, (int(tile) // 256) * 256)
    tile = min(tile, 4096)                           # v7x (64 MiB VMEM) headroom
    while tile > 256 and (n + tile - 1) // tile < 2:
        tile //= 2
    if (n + tile - 1) // tile < 2 and n > 128:
        tile = 128
    return tile


def _run(kernel_fn, index_list, point_list, tables, reso, out_rows, tile):
    """Pad to a multiple of `tile` points and launch a 1-D point grid."""
    n = index_list.shape[0]
    tile = _choose_tile(n, tile)
    n_pad = ((n + tile - 1) // tile) * tile

    idx2 = jnp.pad(index_list.astype(jnp.int32), (0, n_pad - n))[None, :]
    pts2 = jnp.pad(point_list.astype(jnp.float32).T, ((0, 0), (0, n_pad - n)))
    wx, wy, wz = tables

    table_spec = pl.BlockSpec((8, reso), lambda i: (0, 0))
    out = pl.pallas_call(
        functools.partial(kernel_fn, reso=reso),
        out_shape=jax.ShapeDtypeStruct((out_rows, n_pad), jnp.float32),
        grid_spec=pltpu.PrefetchScalarGridSpec(
            num_scalar_prefetch=0,
            grid=(n_pad // tile,),
            in_specs=[
                pl.BlockSpec((1, tile), lambda i: (0, i)),   # voxel indices
                pl.BlockSpec((3, tile), lambda i: (0, i)),   # points (coord-major)
                table_spec, table_spec, table_spec,          # per-axis tables
            ],
            out_specs=pl.BlockSpec((out_rows, tile), lambda i: (0, i)),
        ),
        compiler_params=pltpu.CompilerParams(
            dimension_semantics=("parallel",)),
    )(idx2, pts2, wx, wy, wz)
    return out[:, :n]


# ----------------------------------------------------------------------------
# Module wrapper (parameter setup + table construction = glue in plain JAX)
# ----------------------------------------------------------------------------
class QuadricGridPallas:
    def __init__(self, reso: int = 128, tile: int = 2048):
        self.reso = reso
        self.tile = tile                  # sweep parameter (512-4096 sensible)
        # Deterministic init, exactly as the PyTorch __init__ / init_as_sphere.
        self.xLayer = jnp.ones(reso, jnp.float32)
        self.yLayer = jnp.ones(reso, jnp.float32)
        self.zLayer = jnp.ones(reso, jnp.float32)
        radius = 1.0 * reso
        c = 1.0 - reso
        self.offset = jnp.array(
            [2.0 * c, 2.0 * c, 2.0 * c, 3.0 * c * c - radius * radius],
            jnp.float32)
        self._fwd = jax.jit(self._forward)

    @staticmethod
    def _scan(layer, off0):
        # a3[0] = off0 ; a3[i] = a3[i-1] + 2*layer[i-1] + 2*layer[i]
        inc3 = 2.0 * layer[:-1] + 2.0 * layer[1:]
        a3 = jnp.concatenate(
            [jnp.zeros((1,), jnp.float32), jnp.cumsum(inc3)]) + off0
        # a6[0] = 0 ; a6[i] = a6[i-1] + 3*layer[i-1] + layer[i] + 2*a3[i-1]
        inc6 = 3.0 * layer[:-1] + layer[1:] + 2.0 * a3[:-1]
        a6 = jnp.concatenate(
            [jnp.zeros((1,), jnp.float32), jnp.cumsum(inc6)])
        return a3, a6

    def _tables(self):
        """Three per-axis (8, reso) bf16 tables; only the a6 row is hi/lo split."""
        reso = self.reso
        xa3, xa6 = self._scan(self.xLayer, self.offset[0])
        ya4, ya6 = self._scan(self.yLayer, self.offset[1])
        za5, za6 = self._scan(self.zLayer, self.offset[2])
        zero = jnp.zeros((reso,), jnp.float32)

        def block(lin_row, a_row, a6_row, slot):
            rows = [zero] * 8
            rows[slot] = lin_row                     # channel 0/1/2
            rows[3 + slot] = a_row                   # channel 3/4/5
            hi = a6_row.astype(jnp.bfloat16)
            rows[6] = hi.astype(jnp.float32)         # channel 6 hi
            rows[7] = a6_row - hi.astype(jnp.float32)   # channel 6 lo
            return jnp.stack(rows).astype(jnp.bfloat16)    # (8, reso) bf16

        # offset[3] folded into the x block of row 6 so the summed gather gives
        # g6 = off3 + a6x + a6y + a6z.
        wx = block(self.xLayer, xa3, xa6 + self.offset[3], 0)
        wy = block(self.yLayer, ya4, ya6, 1)
        wz = block(self.zLayer, za5, za6, 2)
        return wx, wy, wz

    def _forward(self, renderPointList, renderIndexList, sdfPointList,
                 sdfIndexList):
        tables = self._tables()
        sdf = _run(_sdf_kernel, sdfIndexList, sdfPointList, tables, self.reso,
                   out_rows=1, tile=self.tile)
        nrm = _run(_normal_kernel, renderIndexList, renderPointList, tables,
                   self.reso, out_rows=3, tile=self.tile)
        return sdf[0], nrm.T                         # (N_sdf,), (N_render, 3)

    def __call__(self, renderPointList, renderIndexList, sdfPointList,
                 sdfIndexList):
        return self._fwd(renderPointList, renderIndexList, sdfPointList,
                         sdfIndexList)


# ----------------------------------------------------------------------------
# NumPy reference (mirrors the PyTorch code, incl. sdfGrid materialization)
# ----------------------------------------------------------------------------
def reference_forward(reso, rp, ri, sp, si):
    xL = np.ones(reso, np.float64)
    yL = np.ones(reso, np.float64)
    zL = np.ones(reso, np.float64)
    c = 1.0 - reso
    offset = np.array([2 * c, 2 * c, 2 * c, 3 * c * c - float(reso) ** 2],
                      np.float64)
    a3x = np.empty(reso); a3y = np.empty(reso); a3z = np.empty(reso)
    a6x = np.empty(reso); a6y = np.empty(reso); a6z = np.empty(reso)
    a3x[0], a3y[0], a3z[0] = offset[0], offset[1], offset[2]
    a6x[0] = a6y[0] = a6z[0] = 0.0
    for i in range(1, reso):
        a3x[i] = 2 * xL[i - 1] + 2 * xL[i] + a3x[i - 1]
        a3y[i] = 2 * yL[i - 1] + 2 * yL[i] + a3y[i - 1]
        a3z[i] = 2 * zL[i - 1] + 2 * zL[i] + a3z[i - 1]
    for i in range(1, reso):
        a6x[i] = 3 * xL[i - 1] + xL[i] + 2 * a3x[i - 1] + a6x[i - 1]
        a6y[i] = 3 * yL[i - 1] + yL[i] + 2 * a3y[i - 1] + a6y[i - 1]
        a6z[i] = 3 * zL[i - 1] + zL[i] + 2 * a3z[i - 1] + a6z[i - 1]
    grid = np.empty((reso, reso, reso, 7), np.float64)
    grid[..., 0] = xL[None, None, :]
    grid[..., 1] = yL[None, :, None]
    grid[..., 2] = zL[:, None, None]
    grid[..., 3] = a3x[None, None, :]
    grid[..., 4] = a3y[None, :, None]
    grid[..., 5] = a3z[:, None, None]
    grid[..., 6] = (offset[3] + a6x[None, None, :] + a6y[None, :, None]
                    + a6z[:, None, None])
    flat = grid.reshape(-1)

    sp = sp.astype(np.float64); rp = rp.astype(np.float64)
    idx = si.astype(np.int64) * 7
    a0 = flat[idx] * sp[:, 0]
    a1 = flat[idx + 1] * sp[:, 1]
    a2 = flat[idx + 2] * sp[:, 2]
    a3 = flat[idx + 3]; a4 = flat[idx + 4]; a5 = flat[idx + 5]; a6 = flat[idx + 6]
    sdf = ((a0 + a3) * sp[:, 0] + (a1 + a4) * sp[:, 1] + (a2 + a5) * sp[:, 2]
           + a6) / np.sqrt((2 * a0 + a3) ** 2 + (2 * a1 + a4) ** 2
                           + (2 * a2 + a5) ** 2) / reso

    idxr = ri.astype(np.int64) * 7
    nx = 2 * flat[idxr] * rp[:, 0] + flat[idxr + 3]
    ny = 2 * flat[idxr + 1] * rp[:, 1] + flat[idxr + 4]
    nz = 2 * flat[idxr + 2] * rp[:, 2] + flat[idxr + 5]
    n = np.stack([nx, ny, nz], axis=1)
    norm = np.maximum(np.linalg.norm(n, axis=1, keepdims=True), 1e-12)
    return sdf, n / norm


# ----------------------------------------------------------------------------
if __name__ == "__main__":
    key = jax.random.PRNGKey(0)
    reso = 32
    n_sdf, n_render = 200, 160
    k1, k2, k3, k4 = jax.random.split(key, 4)
    sdfIndexList = jax.random.randint(k1, (n_sdf,), 0, reso ** 3,
                                      dtype=jnp.int32)
    renderIndexList = jax.random.randint(k2, (n_render,), 0, reso ** 3,
                                         dtype=jnp.int32)
    sdfPointList = jax.random.uniform(k3, (n_sdf, 3), jnp.float32,
                                      0.0, float(reso))
    renderPointList = jax.random.uniform(k4, (n_render, 3), jnp.float32,
                                         0.0, float(reso))

    model = QuadricGridPallas(reso=reso, tile=2048)
    sdfList, normalList = model(renderPointList, renderIndexList,
                                sdfPointList, sdfIndexList)
    jax.block_until_ready((sdfList, normalList))

    ref_sdf, ref_nrm = reference_forward(
        reso,
        np.asarray(renderPointList), np.asarray(renderIndexList),
        np.asarray(sdfPointList), np.asarray(sdfIndexList))

    assert sdfList.shape == (n_sdf,)
    assert normalList.shape == (n_render, 3)
    np.testing.assert_allclose(np.asarray(sdfList), ref_sdf,
                               rtol=2e-3, atol=1e-3)
    np.testing.assert_allclose(np.asarray(normalList), ref_nrm,
                               rtol=2e-3, atol=1e-3)
    print("KERNEL_OK")
</pallas_src>

<mosaic_0001>
module attributes {stable_mosaic.version = 11 : i64} {
  func.func @_normal_kernel(%arg0: i32, %arg1: memref<1x128xi32, #tpu.memory_space<vmem>>, %arg2: memref<3x128xf32, #tpu.memory_space<vmem>>, %arg3: memref<8x32xbf16, #tpu.memory_space<vmem>>, %arg4: memref<8x32xbf16, #tpu.memory_space<vmem>>, %arg5: memref<8x32xbf16, #tpu.memory_space<vmem>>, %arg6: memref<3x128xf32, #tpu.memory_space<vmem>>) attributes {dimension_semantics = [#tpu.dimension_semantics<parallel>], iteration_bounds = array<i64: 2>, scalar_prefetch = 0 : i64, scratch_operands = 0 : i64, tpu.core_type = #tpu.core_type<tc>, window_params = [{transform_indices = @transform_0, window_bounds = array<i64: 1, 128>}, {transform_indices = @transform_1, window_bounds = array<i64: 3, 128>}, {pipeline_mode = #tpu.pipeline_mode<synchronous>, transform_indices = @transform_2, window_bounds = array<i64: 8, 32>}, {pipeline_mode = #tpu.pipeline_mode<synchronous>, transform_indices = @transform_3, window_bounds = array<i64: 8, 32>}, {pipeline_mode = #tpu.pipeline_mode<synchronous>, transform_indices = @transform_4, window_bounds = array<i64: 8, 32>}, {transform_indices = @transform_5, window_bounds = array<i64: 3, 128>}]} {
    %c0 = arith.constant 0 : index
    %c0_0 = arith.constant 0 : index
    %0 = vector.load %arg1[%c0, %c0_0] : memref<1x128xi32, #tpu.memory_space<vmem>>, vector<1x128xi32>
    %c0_1 = arith.constant 0 : index
    %c0_2 = arith.constant 0 : index
    %1 = vector.load %arg3[%c0_1, %c0_2] : memref<8x32xbf16, #tpu.memory_space<vmem>>, vector<8x32xbf16>
    %c0_3 = arith.constant 0 : index
    %c0_4 = arith.constant 0 : index
    %2 = vector.load %arg4[%c0_3, %c0_4] : memref<8x32xbf16, #tpu.memory_space<vmem>>, vector<8x32xbf16>
    %c0_5 = arith.constant 0 : index
    %c0_6 = arith.constant 0 : index
    %3 = vector.load %arg5[%c0_5, %c0_6] : memref<8x32xbf16, #tpu.memory_space<vmem>>, vector<8x32xbf16>
    %c31_i32 = arith.constant 31 : i32
    %4 = vector.broadcast %c31_i32 : i32 to vector<1x128xi32>
    %5 = arith.andi %0, %4 : vector<1x128xi32>
    %c5_i32 = arith.constant 5 : i32
    %6 = vector.broadcast %c5_i32 : i32 to vector<1x128xi32>
    %7 = arith.shrsi %0, %6 : vector<1x128xi32>
    %c31_i32_7 = arith.constant 31 : i32
    %8 = vector.broadcast %c31_i32_7 : i32 to vector<1x128xi32>
    %9 = arith.andi %7, %8 : vector<1x128xi32>
    %c10_i32 = arith.constant 10 : i32
    %10 = vector.broadcast %c10_i32 : i32 to vector<1x128xi32>
    %11 = arith.shrsi %0, %10 : vector<1x128xi32>
    %12 = tpu.iota {dimensions = array<i32: 0>} : vector<32x128xi32>
    %13 = vector.broadcast %5 : vector<1x128xi32> to vector<32x128xi32>
    %14 = arith.cmpi eq, %12, %13 : vector<32x128xi32>
    %15 = arith.extui %14 : vector<32x128xi1> to vector<32x128xi32>
    %16 = arith.sitofp %15 : vector<32x128xi32> to vector<32x128xf32>
    %17 = arith.truncf %16 : vector<32x128xf32> to vector<32x128xbf16>
    %18 = vector.broadcast %9 : vector<1x128xi32> to vector<32x128xi32>
    %19 = arith.cmpi eq, %12, %18 : vector<32x128xi32>
    %20 = arith.extui %19 : vector<32x128xi1> to vector<32x128xi32>
    %21 = arith.sitofp %20 : vector<32x128xi32> to vector<32x128xf32>
    %22 = arith.truncf %21 : vector<32x128xf32> to vector<32x128xbf16>
    %23 = vector.broadcast %11 : vector<1x128xi32> to vector<32x128xi32>
    %24 = arith.cmpi eq, %12, %23 : vector<32x128xi32>
    %25 = arith.extui %24 : vector<32x128xi1> to vector<32x128xi32>
    %26 = arith.sitofp %25 : vector<32x128xi32> to vector<32x128xf32>
    %27 = arith.truncf %26 : vector<32x128xf32> to vector<32x128xbf16>
    %cst = arith.constant dense<0.000000e+00> : vector<8x128xf32>
    %28 = tpu.matmul %1, %17, %cst {dimension_numbers = #tpu.dot_dimension_numbers<[1], [0], [0], [1], [0, 0, 1, 1], [], []>} : vector<8x32xbf16>, vector<32x128xbf16>, vector<8x128xf32> -> vector<8x128xf32>
    %cst_8 = arith.constant dense<0.000000e+00> : vector<8x128xf32>
    %29 = tpu.matmul %2, %22, %cst_8 {dimension_numbers = #tpu.dot_dimension_numbers<[1], [0], [0], [1], [0, 0, 1, 1], [], []>} : vector<8x32xbf16>, vector<32x128xbf16>, vector<8x128xf32> -> vector<8x128xf32>
    %30 = arith.addf %28, %29 : vector<8x128xf32>
    %cst_9 = arith.constant dense<0.000000e+00> : vector<8x128xf32>
    %31 = tpu.matmul %3, %27, %cst_9 {dimension_numbers = #tpu.dot_dimension_numbers<[1], [0], [0], [1], [0, 0, 1, 1], [], []>} : vector<8x32xbf16>, vector<32x128xbf16>, vector<8x128xf32> -> vector<8x128xf32>
    %32 = arith.addf %30, %31 : vector<8x128xf32>
    %c0_10 = arith.constant 0 : index
    %c0_11 = arith.constant 0 : index
    %33 = vector.load %arg2[%c0_10, %c0_11] : memref<3x128xf32, #tpu.memory_space<vmem>>, vector<3x128xf32>
    %34 = vector.extract_strided_slice %32 {offsets = [0, 0], sizes = [3, 128], strides = [1, 1]} : vector<8x128xf32> to vector<3x128xf32>
    %cst_12 = arith.constant 2.000000e+00 : f32
    %35 = vector.broadcast %cst_12 : f32 to vector<3x128xf32>
    %36 = arith.mulf %35, %34 : vector<3x128xf32>
    %37 = arith.mulf %36, %33 : vector<3x128xf32>
    %38 = vector.extract_strided_slice %32 {offsets = [3, 0], sizes = [3, 128], strides = [1, 1]} : vector<8x128xf32> to vector<3x128xf32>
    %39 = arith.addf %37, %38 : vector<3x128xf32>
    %40 = arith.mulf %39, %39 : vector<3x128xf32>
    %cst_13 = arith.constant dense<0.000000e+00> : vector<128xf32>
    %41 = vector.multi_reduction <add>, %40, %cst_13 [0] : vector<3x128xf32> to vector<128xf32>
    %42 = vector.shape_cast %41 : vector<128xf32> to vector<1x128xf32>
    %cst_14 = arith.constant 1.000000e-24 : f32
    %43 = vector.broadcast %cst_14 : f32 to vector<1x128xf32>
    %44 = arith.maximumf %42, %43 : vector<1x128xf32>
    %45 = math.rsqrt %44 : vector<1x128xf32>
    %46 = vector.broadcast %45 : vector<1x128xf32> to vector<3x128xf32>
    %47 = arith.mulf %39, %46 : vector<3x128xf32>
    %c0_15 = arith.constant 0 : index
    %c0_16 = arith.constant 0 : index
    %48 = vector.load %arg6[%c0_15, %c0_16] : memref<3x128xf32, #tpu.memory_space<vmem>>, vector<3x128xf32>
    tpu.vector_store %arg6[%c0_15, %c0_16], %47 {strides = array<i32>} : memref<3x128xf32, #tpu.memory_space<vmem>>, vector<3x128xf32>,
    return
  }
  func.func @transform_0(%arg0: i32) -> (i32, i32) {
    %c0_i32 = arith.constant 0 : i32
    %c0_i32_0 = arith.constant 0 : i32
    return %c0_i32, %arg0 : i32, i32
  }
  func.func @transform_1(%arg0: i32) -> (i32, i32) {
    %c0_i32 = arith.constant 0 : i32
    %c0_i32_0 = arith.constant 0 : i32
    return %c0_i32, %arg0 : i32, i32
  }
  func.func @transform_2(%arg0: i32) -> (i32, i32) {
    %c0_i32 = arith.constant 0 : i32
    %c0_i32_0 = arith.constant 0 : i32
    %c0_i32_1 = arith.constant 0 : i32
    return %c0_i32, %c0_i32_0 : i32, i32
  }
  func.func @transform_3(%arg0: i32) -> (i32, i32) {
    %c0_i32 = arith.constant 0 : i32
    %c0_i32_0 = arith.constant 0 : i32
    %c0_i32_1 = arith.constant 0 : i32
    return %c0_i32, %c0_i32_0 : i32, i32
  }
  func.func @transform_4(%arg0: i32) -> (i32, i32) {
    %c0_i32 = arith.constant 0 : i32
    %c0_i32_0 = arith.constant 0 : i32
    %c0_i32_1 = arith.constant 0 : i32
    return %c0_i32, %c0_i32_0 : i32, i32
  }
  func.func @transform_5(%arg0: i32) -> (i32, i32) {
    %c0_i32 = arith.constant 0 : i32
    %c0_i32_0 = arith.constant 0 : i32
    return %c0_i32, %arg0 : i32, i32
  }
}

module attributes {stable_mosaic.version = 11 : i64} {
  func.func @_sdf_kernel(%arg0: i32, %arg1: memref<1x128xi32, #tpu.memory_space<vmem>>, %arg2: memref<3x128xf32, #tpu.memory_space<vmem>>, %arg3: memref<8x32xbf16, #tpu.memory_space<vmem>>, %arg4: memref<8x32xbf16, #tpu.memory_space<vmem>>, %arg5: memref<8x32xbf16, #tpu.memory_space<vmem>>, %arg6: memref<1x128xf32, #tpu.memory_space<vmem>>) attributes {dimension_semantics = [#tpu.dimension_semantics<parallel>], iteration_bounds = array<i64: 2>, scalar_prefetch = 0 : i64, scratch_operands = 0 : i64, tpu.core_type = #tpu.core_type<tc>, window_params = [{transform_indices = @transform_0, window_bounds = array<i64: 1, 128>}, {transform_indices = @transform_1, window_bounds = array<i64: 3, 128>}, {pipeline_mode = #tpu.pipeline_mode<synchronous>, transform_indices = @transform_2, window_bounds = array<i64: 8, 32>}, {pipeline_mode = #tpu.pipeline_mode<synchronous>, transform_indices = @transform_3, window_bounds = array<i64: 8, 32>}, {pipeline_mode = #tpu.pipeline_mode<synchronous>, transform_indices = @transform_4, window_bounds = array<i64: 8, 32>}, {transform_indices = @transform_5, window_bounds = array<i64: 1, 128>}]} {
    %c0 = arith.constant 0 : index
    %c0_0 = arith.constant 0 : index
    %0 = vector.load %arg1[%c0, %c0_0] : memref<1x128xi32, #tpu.memory_space<vmem>>, vector<1x128xi32>
    %c0_1 = arith.constant 0 : index
    %c0_2 = arith.constant 0 : index
    %1 = vector.load %arg3[%c0_1, %c0_2] : memref<8x32xbf16, #tpu.memory_space<vmem>>, vector<8x32xbf16>
    %c0_3 = arith.constant 0 : index
    %c0_4 = arith.constant 0 : index
    %2 = vector.load %arg4[%c0_3, %c0_4] : memref<8x32xbf16, #tpu.memory_space<vmem>>, vector<8x32xbf16>
    %c0_5 = arith.constant 0 : index
    %c0_6 = arith.constant 0 : index
    %3 = vector.load %arg5[%c0_5, %c0_6] : memref<8x32xbf16, #tpu.memory_space<vmem>>, vector<8x32xbf16>
    %c31_i32 = arith.constant 31 : i32
    %4 = vector.broadcast %c31_i32 : i32 to vector<1x128xi32>
    %5 = arith.andi %0, %4 : vector<1x128xi32>
    %c5_i32 = arith.constant 5 : i32
    %6 = vector.broadcast %c5_i32 : i32 to vector<1x128xi32>
    %7 = arith.shrsi %0, %6 : vector<1x128xi32>
    %c31_i32_7 = arith.constant 31 : i32
    %8 = vector.broadcast %c31_i32_7 : i32 to vector<1x128xi32>
    %9 = arith.andi %7, %8 : vector<1x128xi32>
    %c10_i32 = arith.constant 10 : i32
    %10 = vector.broadcast %c10_i32 : i32 to vector<1x128xi32>
    %11 = arith.shrsi %0, %10 : vector<1x128xi32>
    %12 = tpu.iota {dimensions = array<i32: 0>} : vector<32x128xi32>
    %13 = vector.broadcast %5 : vector<1x128xi32> to vector<32x128xi32>
    %14 = arith.cmpi eq, %12, %13 : vector<32x128xi32>
    %15 = arith.extui %14 : vector<32x128xi1> to vector<32x128xi32>
    %16 = arith.sitofp %15 : vector<32x128xi32> to vector<32x128xf32>
    %17 = arith.truncf %16 : vector<32x128xf32> to vector<32x128xbf16>
    %18 = vector.broadcast %9 : vector<1x128xi32> to vector<32x128xi32>
    %19 = arith.cmpi eq, %12, %18 : vector<32x128xi32>
    %20 = arith.extui %19 : vector<32x128xi1> to vector<32x128xi32>
    %21 = arith.sitofp %20 : vector<32x128xi32> to vector<32x128xf32>
    %22 = arith.truncf %21 : vector<32x128xf32> to vector<32x128xbf16>
    %23 = vector.broadcast %11 : vector<1x128xi32> to vector<32x128xi32>
    %24 = arith.cmpi eq, %12, %23 : vector<32x128xi32>
    %25 = arith.extui %24 : vector<32x128xi1> to vector<32x128xi32>
    %26 = arith.sitofp %25 : vector<32x128xi32> to vector<32x128xf32>
    %27 = arith.truncf %26 : vector<32x128xf32> to vector<32x128xbf16>
    %cst = arith.constant dense<0.000000e+00> : vector<8x128xf32>
    %28 = tpu.matmul %1, %17, %cst {dimension_numbers = #tpu.dot_dimension_numbers<[1], [0], [0], [1], [0, 0, 1, 1], [], []>} : vector<8x32xbf16>, vector<32x128xbf16>, vector<8x128xf32> -> vector<8x128xf32>
    %cst_8 = arith.constant dense<0.000000e+00> : vector<8x128xf32>
    %29 = tpu.matmul %2, %22, %cst_8 {dimension_numbers = #tpu.dot_dimension_numbers<[1], [0], [0], [1], [0, 0, 1, 1], [], []>} : vector<8x32xbf16>, vector<32x128xbf16>, vector<8x128xf32> -> vector<8x128xf32>
    %30 = arith.addf %28, %29 : vector<8x128xf32>
    %cst_9 = arith.constant dense<0.000000e+00> : vector<8x128xf32>
    %31 = tpu.matmul %3, %27, %cst_9 {dimension_numbers = #tpu.dot_dimension_numbers<[1], [0], [0], [1], [0, 0, 1, 1], [], []>} : vector<8x32xbf16>, vector<32x128xbf16>, vector<8x128xf32> -> vector<8x128xf32>
    %32 = arith.addf %30, %31 : vector<8x128xf32>
    %c0_10 = arith.constant 0 : index
    %c0_11 = arith.constant 0 : index
    %33 = vector.load %arg2[%c0_10, %c0_11] : memref<3x128xf32, #tpu.memory_space<vmem>>, vector<3x128xf32>
    %34 = vector.extract_strided_slice %32 {offsets = [0, 0], sizes = [3, 128], strides = [1, 1]} : vector<8x128xf32> to vector<3x128xf32>
    %35 = arith.mulf %34, %33 : vector<3x128xf32>
    %36 = vector.extract_strided_slice %32 {offsets = [3, 0], sizes = [3, 128], strides = [1, 1]} : vector<8x128xf32> to vector<3x128xf32>
    %37 = arith.addf %35, %36 : vector<3x128xf32>
    %38 = vector.extract_strided_slice %32 {offsets = [6, 0], sizes = [1, 128], strides = [1, 1]} : vector<8x128xf32> to vector<1x128xf32>
    %39 = vector.extract_strided_slice %32 {offsets = [7, 0], sizes = [1, 128], strides = [1, 1]} : vector<8x128xf32> to vector<1x128xf32>
    %40 = arith.addf %38, %39 : vector<1x128xf32>
    %41 = arith.mulf %37, %33 : vector<3x128xf32>
    %cst_12 = arith.constant dense<0.000000e+00> : vector<128xf32>
    %42 = vector.multi_reduction <add>, %41, %cst_12 [0] : vector<3x128xf32> to vector<128xf32>
    %43 = vector.shape_cast %42 : vector<128xf32> to vector<1x128xf32>
    %44 = arith.addf %43, %40 : vector<1x128xf32>
    %45 = arith.addf %35, %37 : vector<3x128xf32>
    %46 = arith.mulf %45, %45 : vector<3x128xf32>
    %cst_13 = arith.constant dense<0.000000e+00> : vector<128xf32>
    %47 = vector.multi_reduction <add>, %46, %cst_13 [0] : vector<3x128xf32> to vector<128xf32>
    %48 = vector.shape_cast %47 : vector<128xf32> to vector<1x128xf32>
    %cst_14 = arith.constant 1.024000e+03 : f32
    %49 = vector.broadcast %cst_14 : f32 to vector<1x128xf32>
    %50 = arith.mulf %48, %49 : vector<1x128xf32>
    %51 = math.rsqrt %50 : vector<1x128xf32>
    %52 = arith.mulf %44, %51 : vector<1x128xf32>
    %c0_15 = arith.constant 0 : index
    %c0_16 = arith.constant 0 : index
    %53 = vector.load %arg6[%c0_15, %c0_16] : memref<1x128xf32, #tpu.memory_space<vmem>>, vector<1x128xf32>
    tpu.vector_store %arg6[%c0_15, %c0_16], %52 {strides = array<i32>} : memref<1x128xf32, #tpu.memory_space<vmem>>, vector<1x128xf32>,
    return
  }
  func.func @transform_0(%arg0: i32) -> (i32, i32) {
    %c0_i32 = arith.constant 0 : i32
    %c0_i32_0 = arith.constant 0 : i32
    return %c0_i32, %arg0 : i32, i32
  }
  func.func @transform_1(%arg0: i32) -> (i32, i32) {
    %c0_i32 = arith.constant 0 : i32
    %c0_i32_0 = arith.constant 0 : i32
    return %c0_i32, %arg0 : i32, i32
  }
  func.func @transform_2(%arg0: i32) -> (i32, i32) {
    %c0_i32 = arith.constant 0 : i32
    %c0_i32_0 = arith.constant 0 : i32
    %c0_i32_1 = arith.constant 0 : i32
    return %c0_i32, %c0_i32_0 : i32, i32
  }
  func.func @transform_3(%arg0: i32) -> (i32, i32) {
    %c0_i32 = arith.constant 0 : i32
    %c0_i32_0 = arith.constant 0 : i32
    %c0_i32_1 = arith.constant 0 : i32
    return %c0_i32, %c0_i32_0 : i32, i32
  }
  func.func @transform_4(%arg0: i32) -> (i32, i32) {
    %c0_i32 = arith.constant 0 : i32
    %c0_i32_0 = arith.constant 0 : i32
    %c0_i32_1 = arith.constant 0 : i32
    return %c0_i32, %c0_i32_0 : i32, i32
  }
  func.func @transform_5(%arg0: i32) -> (i32, i32) {
    %c0_i32 = arith.constant 0 : i32
    %c0_i32_0 = arith.constant 0 : i32
    return %c0_i32, %arg0 : i32, i32
  }
}

</mosaic_0001>

<bundles_post_ra>
// kernel: _forward.3
= control target key start
LH: loop header
LB: loop body
LE: loop exit
PB: predicated region body
PF: predicated region fallthrough
CT: control target
= control target key end

     0   :  { %s638_s18 = smov 0   ;;  %s677_s0 = inlined_call_operand.vmem [shape: s32[1,256], index: 0, kind: input, shape index: {}]   ;;  %s678_s1 = inlined_call_operand.vmem [shape: f32[3,256], index: 1, kind: input, shape index: {}]   ;;  %s679_s2 = inlined_call_operand.vmem [shape: bf16[8,32], index: 2, kind: input, shape index: {}]   ;;  %s680_s3 = inlined_call_operand.vmem [shape: bf16[8,32], index: 3, kind: input, shape index: {}]   ;;  %s681_s4 = inlined_call_operand.vmem [shape: bf16[8,32], index: 4, kind: input, shape index: {}]   ;;  %s682_s5 = inlined_call_operand.vmem [shape: f32[3,256], index: 5, kind: output, shape index: {}]  }
   0x1 LB: > { %s515_s19 = sadd.s32 4294967295, %s603_s18   ;;  %p519_p0 = scmp.ge.s32.totalorder %s603_s18, 1  ;;  %s603_s18 = sphi %s638_s18, %s15_s18  }
   0x2   : > { %p194_p1 = scmp.lt.s32.totalorder %s603_s18, 3 }
   0x4   : > { %p195_p2 = pnand %p519_p0, %p194_p1 }
   0x5   : > { %p223_p3 = scmp.lt.s32.totalorder (!%p195_p2), %s515_s19, 1 }
   0x6   : > { %198 = sbr.rel (%p195_p2) target bundleno = 273 (0x111), region = 40 }
   0xb   : > { %v243_v0 = vlaneseq  ;;  %v605_v1 = vmov 0.0   ;;  %s684_s19 = smov (!%p223_p3, %s515_s19), 1  ;;  %vm606_vm0 = vmmov 0   ;;  %v607_v15 = vmov 1.0|1.0  }
   0xc   : > { %560 = vmatprep.subr.bf16.mxu0 %v605_v1  ;;  %568 = vmatprep.subr.bf16.mxu1 %v605_v1  ;;  %s225_s22 = scalar_lea.vmem %s677_s0, %s684_s19  ;;  %vm302_vm13 = vcmask 261120   ;;  %v236_v16 = vld [vmem:[%s679_s2] sm:$0xf]  ;;  %s520_s29 = sshll.u32 %s684_s19, 2 }
   0xd   : > { %v244_v2 = vshrl.u32 %v243_v0, 7  ;;  %564 = vmatprep.mubr.msk.bf16.mxu0 %vm606_vm0, %v605_v1  ;;  %572 = vmatprep.mubr.msk.bf16.mxu1 %vm606_vm0, %v605_v1  ;;  %v235_v4 = vld [vmem:[%s225_s22] sm:$0x1]  ;;  %s229_s7 = scalar_lea.vmem %s678_s1, %s520_s29  ;;  %s233_s10 = scalar_lea.vmem %s682_s5, %s520_s29 }
   0xe   : > { %v240_v5 = vshra.s32 %v235_v4, 5  ;;  %v239_v8 = vand.u32 31, %v235_v4  ;;  %v242_v10 = vshra.s32 %v235_v4, 10  ;;  %v237_v17 = vld [vmem:[%s680_s3] sm:$0xf] }
   0xf   : > { %v250_v3 = vsub.s32 0, %v244_v2  ;;  %v246_v6 = vadd.s32 16, %v244_v2  ;;  %v247_v7 = vadd.s32 24, %v244_v2  ;;  %v245_v9 = vadd.s32 8, %v244_v2  ;;  %v238_v18 = vld [vmem:[%s681_s4] sm:$0xf] }
  0x10   : > { %v241_v11 = vand.u32 31, %v240_v5  ;;  %v433_v30 = vld [vmem:[%s229_s7] sm:$0x7] }
  0x11   : > { %v251_v12 = vrot.slane %v239_v8, %v250_v3  ;;  %v287_v14 = vrot.slane %v242_v10, %v250_v3 }
  0x12   : > { %v269_v13 = vrot.slane %v241_v11, %v250_v3 }
  0x13   : > { %vm254_vm1 = vcmp.eq.s32.totalorder %v246_v6, %v251_v12  ;;  %vm255_vm2 = vcmp.eq.s32.totalorder %v247_v7, %v251_v12  ;;  %vm252_vm3 = vcmp.eq.s32.totalorder %v244_v2, %v251_v12  ;;  %vm253_vm5 = vcmp.eq.s32.totalorder %v245_v9, %v251_v12 }
  0x14   : > { %vm539_vm4 = vmpackc.low %vm255_vm2, %vm254_vm1  ;;  %vm272_vm6 = vcmp.eq.s32.totalorder %v246_v6, %v269_v13  ;;  %vm273_vm7 = vcmp.eq.s32.totalorder %v247_v7, %v269_v13  ;;  %vm270_vm8 = vcmp.eq.s32.totalorder %v244_v2, %v269_v13  ;;  %vm271_vm9 = vcmp.eq.s32.totalorder %v245_v9, %v269_v13 }
  0x15   : > { %569 = vmatpush3.bf16.msk.msra.mxu1 %vm539_vm4, %v607_v15  ;;  %vm541_vm10 = vmpackc.low %vm253_vm5, %vm252_vm3  ;;  %vm290_vm14 = vcmp.eq.s32.totalorder %v246_v6, %v287_v14  ;;  %vm291_vm15 = vcmp.eq.s32.totalorder %v247_v7, %v287_v14  ;;  %vm288_vm2 = vcmp.eq.s32.totalorder %v244_v2, %v287_v14  ;;  %vm289_vm3 = vcmp.eq.s32.totalorder %v245_v9, %v287_v14 }
  0x16   : > { %vm534_vm11 = vmpackc.low %vm273_vm7, %vm272_vm6  ;;  %570 = vmatprep.subr.bf16.mxu1 %v605_v1 }
  0x17   : > { %561 = vmatpush3.bf16.msk.msra.mxu0 %vm534_vm11, %v607_v15  ;;  %vm536_vm12 = vmpackc.low %vm271_vm9, %vm270_vm8 }
  0x18   : > { %562 = vmatprep.subr.bf16.mxu0 %v605_v1  ;;  %vm544_vm1 = vmpackc.low %vm291_vm15, %vm290_vm14 }
  0x19   : > { %571 = vmatpush3.bf16.msk.msra.mxu1 %vm541_vm10, %v607_v15  ;;  %vm546_vm4 = vmpackc.low %vm289_vm3, %vm288_vm2 }
  0x1b   : > { %563 = vmatpush3.bf16.msk.msra.mxu0 %vm536_vm12, %v607_v15 }
  0x1c   : > { %576 = vmatprep.subr.bf16.mxu0 %v605_v1  ;;  %573 = vmatmul.mubr.msk.bf16.vlgmr.msra.gmra.mxu1 %vm302_vm13, %v236_v16 }
  0x1e   : > { %565 = vmatmul.mubr.msk.bf16.vlgmr.msra.gmra.mxu0 %vm302_vm13, %v237_v17 }
  0x1f   : > { %577 = vmatpush3.bf16.msk.msra.mxu0 %vm544_vm1, %v607_v15  ;;  %580 = vmatprep.mubr.msk.bf16.mxu0 %vm606_vm0, %v605_v1  ;;  %vm441_vm0 = vcmask 1042432  }
  0x20   : > { %578 = vmatprep.subr.bf16.mxu0 %v605_v1 }
  0x23   : > { %579 = vmatpush3.bf16.msk.msra.mxu0 %vm546_vm4, %v607_v15 }
  0x26   : > { %581 = vmatmul.mubr.msk.bf16.vlgmr.msra.gmra.mxu0 %vm302_vm13, %v238_v18 }
  0xdc   : > { %v383_v19 = vpop.f32.mrf.mxu1 }
  0xde   : > { %v340_v20 = vpop.f32.mrf.mxu0  ;;  %v574_v21 = vpop.f32.mrf.mxu1 }
  0xdf   : > { %v384_v27 = vadd.f32 %v383_v19, %v340_v20 }
  0xe0   : > { %v566_v22 = vpop.f32.mrf.mxu0  ;;  %v386_v23 = vpop.f32.mrf.mxu1 }
  0xe2   : > { %v343_v24 = vpop.f32.mrf.mxu0  ;;  %v575_v25 = vpop.f32.mrf.mxu1 }
  0xe4   : > { %v567_v26 = vpop.f32.mrf.mxu0 }
  0xe6   : > { %v426_v28 = vpop.f32.mrf.mxu0 }
  0xe7   : > { %v432_v29 = vadd.f32 %v426_v28, %v384_v27 }
  0xe8   : > { %v582_v31 = vpop.f32.mrf.mxu0 }
  0xe9   : > { %v434_v32 = vmul.f32 2.0, %v432_v29  ;;  %v437_v35 = vrot.slane %v432_v29, 3 }
  0xea   : > { %v429_v33 = vpop.f32.mrf.mxu0 }
  0xeb   : > { %v435_v34 = vmul.f32 %v434_v32, %v433_v30 }
  0xec   : > { %v583_v36 = vpop.f32.mrf.mxu0 }
  0xed   : > { %v439_v37 = vadd.f32 %v437_v35, %v435_v34 }
  0xef   : > { %v440_v38 = vmul.f32 %v439_v37, %v439_v37 }
  0xf1   : > { %v442_v39 = vsel %vm441_vm0, %v440_v38, 0.0 }
  0xf2   : > { %v443_v40 = vrot.slane %v442_v39, 4 }
  0xf4   : > { %v444_v41 = vadd.f32 %v443_v40, %v442_v39 }
  0xf6   : > { %v445_v42 = vrot.slane %v444_v41, 2 }
  0xf8   : > { %v446_v43 = vadd.f32 %v445_v42, %v444_v41 }
  0xfa   : > { %v447_v44 = vrot.slane %v446_v43, 1 }
  0xfc   : > { %v448_v45 = vadd.f32 %v447_v44, %v446_v43 }
  0xfe   : > { %v449_v46 = vmax.f32 %v448_v45, 1e-24 }
 0x100   : > { %595 = vrsqrt.f32 %v449_v46 }
 0x10d   : > { %v596_v47 = vpop.eup %595 }
 0x10e   : > { %v451_v48 = vmul.f32 %v596_v47, %v439_v37 }
 0x110   : > { %452 = vst [vmem:[%s233_s10] sm:$0x7] %v451_v48 }
 0x111 PF: > { %s15_s18 = sadd.s32 1, %s603_s18  }
 0x112   : > { %p12_p4 = scmp.ge.s32.totalorder %s15_s18, 4  }
 0x114   :  { %14 = sbr.rel (!%p12_p4) target bundleno = 1 (0x1), region = 73 }

// kernel: _forward.2
= control target key start
LH: loop header
LB: loop body
LE: loop exit
PB: predicated region body
PF: predicated region fallthrough
CT: control target
= control target key end

     0   :  { %10 = vsyncpa [#allocation3], 0  ;;  %s858_s0 = inlined_call_operand.vmem [shape: s32[1,256], index: 0, kind: input, shape index: {}]   ;;  %s859_s1 = inlined_call_operand.vmem [shape: f32[3,256], index: 1, kind: input, shape index: {}]   ;;  %s860_s2 = inlined_call_operand.vmem [shape: bf16[8,32], index: 2, kind: input, shape index: {}]   ;;  %s861_s3 = inlined_call_operand.vmem [shape: bf16[8,32], index: 3, kind: input, shape index: {}]   ;;  %s862_s4 = inlined_call_operand.vmem [shape: bf16[8,32], index: 4, kind: input, shape index: {}]   ;;  %s863_s5 = inlined_call_operand.hbm [shape: f32[1,256], index: 5, kind: output, shape index: {}]  }
   0x1   :  { %12 = vsyncpa [#allocation3 + $0x1], 0  ;;  %s749_s18 = smov 0   ;;  %s751_s19 = smov 0  }
   0x2   :  { %s753_s20 = smov 0   ;;  %s755_s21 = smov 0  }
   0x3 LB: > { %s770_s22 = sadd.s32 4294967295, %s713_s21   ;;  %s541_s23 = sadd.s32 4294967294, %s713_s21   ;;  %s713_s21 = sphi %s755_s21, %s869_s21   ;;  %s709_s20 = sphi %s753_s20, %s868_s20   ;;  %s705_s19 = sphi %s751_s19, %s867_s19   ;;  %s701_s18 = sphi %s749_s18, %s866_s18  }
   0x4   : > { %s774_s24 = sadd.s32 1, %s713_s21   ;;  %s140_s25 = sadd.s32 1, %s709_s20 }
   0x5   : > { %s137_s26 = ssub.s32 %s713_s21, %s774_s24  ;;  %p150_p0 = scmp.ne.s32.totalorder %s709_s20, %s705_s19 }
   0x6   : > { %p138_p1 = scmp.eq.s32.totalorder %s137_s26, 0  ;;  %p151_p2 = scmp.eq.s32.totalorder %s770_s22, 1 }
   0x7   : > { %p156_p3 = scmp.ne.s32.totalorder %s705_s19, %s701_s18  ;;  %p157_p4 = scmp.eq.s32.totalorder %s541_s23, 1 }
   0x8   : > { %s785_s27 = scalar_select %p138_p1, %s709_s20, %s140_s25  }
   0x9   : > { %p787_p5 = por %p151_p2, %p150_p0  ;;  %p791_p6 = por %p157_p4, %p156_p3 }
   0xa   : > { %p544_p7 = scmp.ge.s32.totalorder %s713_s21, 1  ;;  %p197_p8 = scmp.lt.s32.totalorder %s713_s21, 3 }
   0xc   : > { %p198_p9 = pnand %p544_p7, %p197_p8 }
   0xd   : > { %p226_p10 = scmp.lt.s32.totalorder (!%p198_p9), %s770_s22, 1  ;;  %s224_s25 = sand.u32 (!%p198_p9), 1, %s705_s19  }
   0xe   : > { %201 = sbr.rel (%p198_p9) target bundleno = 294 (0x126), region = 40  ;;  %s573_s26 = sshll.u32 (!%p198_p9), %s770_s22, 4 }
   0xf   : > { %s475_s9 = scalar_lea.hbm (!%p198_p9), %s863_s5, %s573_s26  ;;  %s465_s10 = scalar_lea.sflag (!%p198_p9), [#allocation3], %s224_s25 }
  0x10   : > { %s718_s12 = smov (!%p198_p9), [#allocation2]  }
  0x11   : > { %s657_s13 = sshll.u32 (!%p198_p9), %s718_s12, 4  ;;  %s658_s13 = int_to_ptr.vmem [resolvable:$false] %s657_s13 }
  0x13   : > { %v242_v0 = vlaneseq  ;;  %v715_v1 = vmov 0.0   ;;  %s799_s30 = scalar_select %p226_p10, %s770_s22, 1  ;;  %vm716_vm0 = vmmov 0   ;;  %v717_v15 = vmov 1.0|1.0  }
  0x14   : > { %585 = vmatprep.subr.bf16.mxu0 %v715_v1  ;;  %593 = vmatprep.subr.bf16.mxu1 %v715_v1  ;;  %vm301_vm13 = vcmask 261120   ;;  %v235_v16 = vld [vmem:[%s860_s2] sm:$0xf]  ;;  %s659_s22 = scalar_lea.vmem %s658_s13, 32 }
  0x15   : > { %v243_v2 = vshrl.u32 %v242_v0, 7  ;;  %589 = vmatprep.mubr.msk.bf16.mxu0 %vm716_vm0, %v715_v1  ;;  %597 = vmatprep.mubr.msk.bf16.mxu1 %vm716_vm0, %v715_v1  ;;  %s228_s8 = scalar_lea.vmem %s858_s0, %s799_s30  ;;  %v236_v17 = vld [vmem:[%s861_s3] sm:$0xf]  ;;  %s545_s15 = sshll.u32 %s799_s30, 2 }
  0x16   : > { %v234_v4 = vld [vmem:[%s228_s8] sm:$0x1]  ;;  %s232_s23 = scalar_lea.vmem %s859_s1, %s545_s15  ;;  %s225_s30 = scalar_lea.vmem [#allocation2], %s224_s25 }
  0x17   : > { %v249_v3 = vsub.s32 0, %v243_v2  ;;  %v239_v5 = vshra.s32 %v234_v4, 5  ;;  %v245_v6 = vadd.s32 16, %v243_v2  ;;  %v246_v7 = vadd.s32 24, %v243_v2  ;;  %v237_v18 = vld [vmem:[%s862_s4] sm:$0xf] }
  0x18   : > { %v238_v8 = vand.u32 31, %v234_v4  ;;  %v244_v9 = vadd.s32 8, %v243_v2  ;;  %v241_v10 = vshra.s32 %v234_v4, 10  ;;  %v432_v29 = vld [vmem:[%s232_s23] sm:$0x7]  ;;  %s477_s6 = sshll.u32 %s225_s30, 4  ;;  %s478_s6 = int_to_ptr.vmem [resolvable:$true] %s477_s6 }
  0x19   : > { %v240_v11 = vand.u32 31, %v239_v5  ;;  %s653_s11 = scalar_lea.vmem %s478_s6, 16  ;;  %p660_p0 = scmp.lt.s32.totalorder %s478_s6, %s658_s13 }
  0x1a   : > { %v250_v12 = vrot.slane %v238_v8, %v249_v3  ;;  %v286_v14 = vrot.slane %v241_v10, %v249_v3  ;;  %p654_p11 = scmp.ne.s32.totalorder %s478_s6, %s653_s11  ;;  %p661_p1 = scmp.lt.s32.totalorder %s659_s22, %s653_s11 }
  0x1b   : > { %v268_v13 = vrot.slane %v240_v11, %v249_v3 }
  0x1c   : > { %vm253_vm1 = vcmp.eq.s32.totalorder %v245_v6, %v250_v12  ;;  %vm254_vm2 = vcmp.eq.s32.totalorder %v246_v7, %v250_v12  ;;  %vm251_vm3 = vcmp.eq.s32.totalorder %v243_v2, %v250_v12  ;;  %vm252_vm5 = vcmp.eq.s32.totalorder %v244_v9, %v250_v12  ;;  %p655_p12 = pnand %p654_p11, %p787_p5  ;;  %p662_p2 = por %p661_p1, %p660_p0 }
  0x1d   : > { %vm563_vm4 = vmpackc.low %vm254_vm2, %vm253_vm1  ;;  %vm271_vm6 = vcmp.eq.s32.totalorder %v245_v6, %v268_v13  ;;  %vm272_vm7 = vcmp.eq.s32.totalorder %v246_v7, %v268_v13  ;;  %vm269_vm8 = vcmp.eq.s32.totalorder %v243_v2, %v268_v13  ;;  %vm270_vm9 = vcmp.eq.s32.totalorder %v244_v9, %v268_v13 }
  0x1e   : > { %594 = vmatpush3.bf16.msk.msra.mxu1 %vm563_vm4, %v717_v15  ;;  %vm565_vm10 = vmpackc.low %vm252_vm5, %vm251_vm3  ;;  %vm289_vm14 = vcmp.eq.s32.totalorder %v245_v6, %v286_v14  ;;  %vm290_vm15 = vcmp.eq.s32.totalorder %v246_v7, %v286_v14  ;;  %vm287_vm2 = vcmp.eq.s32.totalorder %v243_v2, %v286_v14  ;;  %vm288_vm3 = vcmp.eq.s32.totalorder %v244_v9, %v286_v14  ;;  %p656_p13 = pneg %p655_p12 }
  0x1f   : > { %vm558_vm11 = vmpackc.low %vm272_vm7, %vm271_vm6  ;;  %595 = vmatprep.subr.bf16.mxu1 %v715_v1 }
  0x20   : > { %586 = vmatpush3.bf16.msk.msra.mxu0 %vm558_vm11, %v717_v15  ;;  %vm560_vm12 = vmpackc.low %vm270_vm9, %vm269_vm8  ;;  %p663_p3 = pnand %p662_p2, %p656_p13 }
  0x21   : > { %587 = vmatprep.subr.bf16.mxu0 %v715_v1  ;;  %vm568_vm1 = vmpackc.low %vm290_vm15, %vm289_vm14 }
  0x22   : > { %596 = vmatpush3.bf16.msk.msra.mxu1 %vm565_vm10, %v717_v15  ;;  %vm570_vm4 = vmpackc.low %vm288_vm3, %vm287_vm2 }
  0x24   : > { %588 = vmatpush3.bf16.msk.msra.mxu0 %vm560_vm12, %v717_v15 }
  0x25   : > { %601 = vmatprep.subr.bf16.mxu0 %v715_v1  ;;  %598 = vmatmul.mubr.msk.bf16.vlgmr.msra.gmra.mxu1 %vm301_vm13, %v235_v16 }
  0x27   : > { %590 = vmatmul.mubr.msk.bf16.vlgmr.msra.gmra.mxu0 %vm301_vm13, %v236_v17 }
  0x28   : > { %602 = vmatpush3.bf16.msk.msra.mxu0 %vm568_vm1, %v717_v15  ;;  %605 = vmatprep.mubr.msk.bf16.mxu0 %vm716_vm0, %v715_v1  ;;  %vm442_vm0 = vcmask 1042432  }
  0x29   : > { %603 = vmatprep.subr.bf16.mxu0 %v715_v1 }
  0x2c   : > { %604 = vmatpush3.bf16.msk.msra.mxu0 %vm570_vm4, %v717_v15 }
  0x2f   : > { %606 = vmatmul.mubr.msk.bf16.vlgmr.msra.gmra.mxu0 %vm301_vm13, %v237_v18 }
  0xe5   : > { %v382_v19 = vpop.f32.mrf.mxu1 }
  0xe7   : > { %v339_v20 = vpop.f32.mrf.mxu0  ;;  %v599_v21 = vpop.f32.mrf.mxu1 }
  0xe8   : > { %v383_v27 = vadd.f32 %v382_v19, %v339_v20 }
  0xe9   : > { %v591_v22 = vpop.f32.mrf.mxu0  ;;  %v385_v23 = vpop.f32.mrf.mxu1 }
  0xeb   : > { %v342_v24 = vpop.f32.mrf.mxu0  ;;  %v600_v25 = vpop.f32.mrf.mxu1 }
  0xed   : > { %v592_v26 = vpop.f32.mrf.mxu0 }
  0xef   : > { %v425_v28 = vpop.f32.mrf.mxu0 }
  0xf0   : > { %v431_v30 = vadd.f32 %v425_v28, %v383_v27 }
  0xf1   : > { %v607_v31 = vpop.f32.mrf.mxu0 }
  0xf2   : > { %v433_v32 = vmul.f32 %v432_v29, %v431_v30  ;;  %v435_v33 = vrot.slane %v431_v30, 3  ;;  %v438_v54 = vrot.slane %v431_v30, 1 }
  0xf3   : > { %v428_v34 = vpop.f32.mrf.mxu0 }
  0xf4   : > { %v437_v35 = vadd.f32 %v435_v33, %v433_v32  ;;  %v440_v56 = vadd.f32 %v438_v54, %v431_v30 }
  0xf5   : > { %v608_v36 = vpop.f32.mrf.mxu0 }
  0xf6   : > { %v441_v37 = vmul.f32 %v437_v35, %v432_v29  ;;  %v451_v38 = vadd.f32 %v437_v35, %v433_v32 }
  0xf8   : > { %v452_v39 = vmul.f32 %v451_v38, %v451_v38  ;;  %v443_v40 = vsel %vm442_vm0, %v441_v37, 0.0 }
  0xf9   : > { %v444_v43 = vrot.slane %v443_v40, 4 }
  0xfa   : > { %v453_v41 = vsel %vm442_vm0, %v452_v39, 0.0 }
  0xfb   : > { %v454_v42 = vrot.slane %v453_v41, 4  ;;  %v445_v47 = vadd.f32 %v444_v43, %v443_v40 }
  0xfd   : > { %v455_v44 = vadd.f32 %v454_v42, %v453_v41  ;;  %v446_v50 = vrot.slane %v445_v47, 2 }
  0xff   : > { %v456_v45 = vrot.slane %v455_v44, 2  ;;  %v447_v52 = vadd.f32 %v446_v50, %v445_v47 }
 0x101   : > { %v457_v46 = vadd.f32 %v456_v45, %v455_v44  ;;  %v448_v53 = vrot.slane %v447_v52, 1 }
 0x103   : > { %v458_v48 = vrot.slane %v457_v46, 1  ;;  %v449_v55 = vadd.f32 %v448_v53, %v447_v52 }
 0x105   : > { %v459_v49 = vadd.f32 %v458_v48, %v457_v46  ;;  %v450_v57 = vadd.f32 %v449_v55, %v440_v56 }
 0x107   : > { %v460_v51 = vmul.f32 1024.0, %v459_v49 }
 0x109   : > { %651 = vrsqrt.f32 %v460_v51 }
 0x116   : > { %v652_v58 = vpop.eup %651 }
 0x117   : > { %v462_v59 = vmul.f32 %v652_v58, %v450_v57 }
 0x119   : > { %463 = vst [vmem:[%s225_s30 - $0x6] sm:$0x40] %v462_v59 }
 0x11a   : > { %666 = shalt.err (!%p663_p3)
}
 0x11b   : > { %s667_s14 = scalar_lea.hbm %s475_s9, 16  ;;  %s671_s17 = scalar_lea.hbm %s863_s5, 32 }
 0x11c   : > { %p668_p4 = scmp.ne.s32.totalorder %s475_s9, %s667_s14  ;;  %p672_p9 = scmp.lt.s32.totalorder %s475_s9, %s863_s5 }
 0x11d   : > { %p673_p10 = scmp.lt.s32.totalorder %s671_s17, %s667_s14 }
 0x11e   : > { %p669_p7 = pnand %p668_p4, %p787_p5 }
 0x11f   : > { %p674_p11 = por %p673_p10, %p672_p9 }
 0x120   : > { %p670_p8 = pneg %p669_p7 }
 0x122   : > { %p675_p12 = pnand %p674_p11, %p670_p8 }
 0x124   : > { %678 = shalt.err (!%p675_p12)
}
 0x125   : > { %609 = dma.vmem_to_hbm [thread:$0]  (%p787_p5), %s478_s6, 16, %s475_s9, %s465_s10  }
 0x126 PF: > { %p615_p13 = scmp.ge.s32.totalorder %s713_s21, 2  ;;  %s489_s26 = sand.u32 1, %s701_s18  }
 0x127   : > { %s490_s30 = scalar_lea.sflag [#allocation3], %s489_s26 }
 0x128   : > { %p612_p0 = pnand %p615_p13, %p791_p6 }
 0x12a   : > { %p613_p1 = pneg %p612_p0 }
 0x12c   : > { %696 = dma.done.wait (%p613_p1), %s490_s30, 16  }
 0x12d   : > { %698 = vsyncadd (%p613_p1), %s490_s30, 4294967280  ;;  %p15_p2 = scmp.ge.s32.totalorder %s774_s24, 4   ;;  %s866_s18 = smov %s705_s19 }
 0x12e   : > { %s867_s19 = smov %s709_s20  ;;  %s868_s20 = smov %s785_s27 }
 0x12f   : > { %s869_s21 = smov %s774_s24  ;;  %17 = sbr.rel (!%p15_p2) target bundleno = 3 (0x3), region = 78 }
 0x134   :  { %494 = vsyncpa [#allocation3], 1 }
 0x135   :  { %496 = vsyncpa [#allocation3 + $0x1], 1 }

</bundles_post_ra>
